<compile_context>
chip_gen: v6e
topology: v6e:2x2x1
jax: 0.10.0
libtpu: 0.0.40
codegen_flags: <defaults>
</compile_context>

<pallas_src>
import math
import jax
import jax.numpy as jnp
from jax.experimental import pallas as pl
from jax.experimental.pallas import tpu as pltpu


def mrnn_fcn_kernel(xcat_ref, wcat_ref, beta_ref, wf_t_ref, bf_ref, out_ref):
    # Single fused matmul: [Bt, 3F] @ [3F, F]  (== x@(U*m)^T + target@(V1*m)^T + mask@V2^T)
    pre = jnp.dot(xcat_ref[...], wcat_ref[...],
                  preferred_element_type=jnp.float32) + beta_ref[...]
    h_t = jax.nn.sigmoid(pre)

    # Final linear (weight pre-transposed in wrapper) + sigmoid.
    final = jnp.dot(h_t, wf_t_ref[...],
                    preferred_element_type=jnp.float32) + bf_ref[...]
    out_ref[...] = jax.nn.sigmoid(final).astype(out_ref.dtype)


def mrnn_fcn_regression(x, missing_mask, target, params, *, block_b=None):
    """Pallas wrapper.

    Wrapper-side prep (constant-foldable / trivially cheap):
      - mask the diagonals of U, V1 and transpose all weights to [in, out]
      - fuse them into one [3F, F] matrix matching a [x | target | mask] input concat
    """
    B, F = x.shape

    # Pre-masked, pre-transposed, fused weight: [3F, F]
    u_t = (params["U"] * params["m"]).T
    v1_t = (params["V1"] * params["m"]).T
    v2_t = params["V2"].T
    w_cat = jnp.concatenate([u_t, v1_t, v2_t], axis=0)

    wf_t = params["W_final"].T                       # [F, F], pre-transposed
    beta2d = params["beta"].reshape(1, F)
    bf2d = params["b_final"].reshape(1, F)

    # Fused input: [B, 3F]  (order must match w_cat stacking order)
    x_cat = jnp.concatenate([x, target, missing_mask], axis=1)

    if block_b is None:
        block_b = B if B <= 512 else 512
    grid_b = pl.cdiv(B, block_b)

    return pl.pallas_call(
        mrnn_fcn_kernel,
        out_shape=jax.ShapeDtypeStruct((B, F), jnp.float32),
        grid=(grid_b,),
        in_specs=[
            pl.BlockSpec((block_b, 3 * F), lambda i: (i, 0)),   # fused inputs (tiled over batch)
            pl.BlockSpec((3 * F, F), lambda i: (0, 0)),         # fused weights (VMEM-resident)
            pl.BlockSpec((1, F), lambda i: (0, 0)),             # beta
            pl.BlockSpec((F, F), lambda i: (0, 0)),             # W_final^T
            pl.BlockSpec((1, F), lambda i: (0, 0)),             # b_final
        ],
        out_specs=pl.BlockSpec((block_b, F), lambda i: (i, 0)),
        compiler_params=pltpu.CompilerParams(
            dimension_semantics=("parallel",)),                 # shards batch tiles across TCs (v7x)
    )(x_cat, w_cat, beta2d, wf_t, bf2d)
    # TODO(synk): output last dim is F=32 (<128 lanes) -> masked partial stores; the module's
    # output shape is fixed at [B, F], so lane-padding would require an extra wrapper-side slice.


def init_params(feature_num, key):
    """Deterministic parameter init mirroring the module's reset_parameters()."""
    stdv = 1.0 / math.sqrt(feature_num)
    ks = jax.random.split(key, 6)
    uni = lambda k, shape: jax.random.uniform(k, shape, jnp.float32, -stdv, stdv)
    params = {
        "U": uni(ks[0], (feature_num, feature_num)),
        "V1": uni(ks[1], (feature_num, feature_num)),
        "V2": uni(ks[2], (feature_num, feature_num)),
        "beta": uni(ks[3], (feature_num,)),
        # nn.Linear(feature_num, feature_num): weight [out, in], bias [out]
        "W_final": uni(ks[4], (feature_num, feature_num)),
        "b_final": uni(ks[5], (feature_num,)),
        "m": jnp.ones((feature_num, feature_num), jnp.float32)
             - jnp.eye(feature_num, dtype=jnp.float32),
    }
    return params


def reference(x, missing_mask, target, p):
    """Pure-JAX reference for sanity checking (mirrors the PyTorch forward)."""
    h = jax.nn.sigmoid(
        x @ (p["U"] * p["m"]).T
        + target @ (p["V1"] * p["m"]).T
        + missing_mask @ p["V2"].T
        + p["beta"]
    )
    return jax.nn.sigmoid(h @ p["W_final"].T + p["b_final"])


if __name__ == "__main__":
    batch = 8
    feature_num = 32

    key = jax.random.PRNGKey(0)
    k_x, k_t, k_m, k_p = jax.random.split(key, 4)

    x = jax.random.normal(k_x, (batch, feature_num), jnp.float32)
    target = jax.random.normal(k_t, (batch, feature_num), jnp.float32)
    missing_mask = (jax.random.uniform(k_m, (batch, feature_num)) > 0.3).astype(jnp.float32)

    params = init_params(feature_num, k_p)

    out = mrnn_fcn_regression(x, missing_mask, target, params)
    out = jax.block_until_ready(out)

    ref = reference(x, missing_mask, target, params)
    assert out.shape == (batch, feature_num)
    assert jnp.allclose(out, ref, atol=1e-5, rtol=1e-5), "mismatch vs reference"

    print("KERNEL_OK")
</pallas_src>

<mosaic_0001>
module attributes {stable_mosaic.version = 11 : i64} {
  func.func @mrnn_fcn_kernel(%arg0: i32, %arg1: memref<8x96xf32, #tpu.memory_space<vmem>>, %arg2: memref<96x32xf32, #tpu.memory_space<vmem>>, %arg3: memref<1x32xf32, #tpu.memory_space<vmem>>, %arg4: memref<32x32xf32, #tpu.memory_space<vmem>>, %arg5: memref<1x32xf32, #tpu.memory_space<vmem>>, %arg6: memref<8x32xf32, #tpu.memory_space<vmem>>) attributes {dimension_semantics = [#tpu.dimension_semantics<parallel>], iteration_bounds = array<i64: 1>, scalar_prefetch = 0 : i64, scratch_operands = 0 : i64, tpu.core_type = #tpu.core_type<tc>, window_params = [{transform_indices = @transform_0, window_bounds = array<i64: 8, 96>}, {pipeline_mode = #tpu.pipeline_mode<synchronous>, transform_indices = @transform_1, window_bounds = array<i64: 96, 32>}, {pipeline_mode = #tpu.pipeline_mode<synchronous>, transform_indices = @transform_2, window_bounds = array<i64: 1, 32>}, {pipeline_mode = #tpu.pipeline_mode<synchronous>, transform_indices = @transform_3, window_bounds = array<i64: 32, 32>}, {pipeline_mode = #tpu.pipeline_mode<synchronous>, transform_indices = @transform_4, window_bounds = array<i64: 1, 32>}, {transform_indices = @transform_5, window_bounds = array<i64: 8, 32>}]} {
    %c0 = arith.constant 0 : index
    %c0_0 = arith.constant 0 : index
    %0 = vector.load %arg1[%c0, %c0_0] : memref<8x96xf32, #tpu.memory_space<vmem>>, vector<8x96xf32>
    %c0_1 = arith.constant 0 : index
    %c0_2 = arith.constant 0 : index
    %1 = vector.load %arg2[%c0_1, %c0_2] : memref<96x32xf32, #tpu.memory_space<vmem>>, vector<96x32xf32>
    %cst = arith.constant dense<0.000000e+00> : vector<8x32xf32>
    %2 = tpu.matmul %0, %1, %cst {dimension_numbers = #tpu.dot_dimension_numbers<[1], [0], [0], [1], [0, 0, 1, 1], [], []>} : vector<8x96xf32>, vector<96x32xf32>, vector<8x32xf32> -> vector<8x32xf32>
    %c0_3 = arith.constant 0 : index
    %c0_4 = arith.constant 0 : index
    %3 = vector.load %arg3[%c0_3, %c0_4] : memref<1x32xf32, #tpu.memory_space<vmem>>, vector<1x32xf32>
    %4 = vector.broadcast %3 : vector<1x32xf32> to vector<8x32xf32>
    %5 = arith.addf %2, %4 : vector<8x32xf32>
    %6 = arith.negf %5 : vector<8x32xf32>
    %7 = math.exp %6 : vector<8x32xf32>
    %cst_5 = arith.constant 1.000000e+00 : f32
    %8 = vector.broadcast %cst_5 : f32 to vector<8x32xf32>
    %9 = arith.addf %8, %7 : vector<8x32xf32>
    %10 = arith.divf %8, %9 : vector<8x32xf32>
    %c0_6 = arith.constant 0 : index
    %c0_7 = arith.constant 0 : index
    %11 = vector.load %arg4[%c0_6, %c0_7] : memref<32x32xf32, #tpu.memory_space<vmem>>, vector<32x32xf32>
    %cst_8 = arith.constant dense<0.000000e+00> : vector<8x32xf32>
    %12 = tpu.matmul %10, %11, %cst_8 {dimension_numbers = #tpu.dot_dimension_numbers<[1], [0], [0], [1], [0, 0, 1, 1], [], []>} : vector<8x32xf32>, vector<32x32xf32>, vector<8x32xf32> -> vector<8x32xf32>
    %c0_9 = arith.constant 0 : index
    %c0_10 = arith.constant 0 : index
    %13 = vector.load %arg5[%c0_9, %c0_10] : memref<1x32xf32, #tpu.memory_space<vmem>>, vector<1x32xf32>
    %14 = vector.broadcast %13 : vector<1x32xf32> to vector<8x32xf32>
    %15 = arith.addf %12, %14 : vector<8x32xf32>
    %16 = arith.negf %15 : vector<8x32xf32>
    %17 = math.exp %16 : vector<8x32xf32>
    %cst_11 = arith.constant 1.000000e+00 : f32
    %18 = vector.broadcast %cst_11 : f32 to vector<8x32xf32>
    %19 = arith.addf %18, %17 : vector<8x32xf32>
    %20 = arith.divf %18, %19 : vector<8x32xf32>
    %c0_12 = arith.constant 0 : index
    %c0_13 = arith.constant 0 : index
    %21 = vector.load %arg6[%c0_12, %c0_13] : memref<8x32xf32, #tpu.memory_space<vmem>>, vector<8x32xf32>
    tpu.vector_store %arg6[%c0_12, %c0_13], %20 {strides = array<i32>} : memref<8x32xf32, #tpu.memory_space<vmem>>, vector<8x32xf32>,
    return
  }
  func.func @transform_0(%arg0: i32) -> (i32, i32) {
    %c0_i32 = arith.constant 0 : i32
    %c0_i32_0 = arith.constant 0 : i32
    return %arg0, %c0_i32 : i32, i32
  }
  func.func @transform_1(%arg0: i32) -> (i32, i32) {
    %c0_i32 = arith.constant 0 : i32
    %c0_i32_0 = arith.constant 0 : i32
    %c0_i32_1 = arith.constant 0 : i32
    return %c0_i32, %c0_i32_0 : i32, i32
  }
  func.func @transform_2(%arg0: i32) -> (i32, i32) {
    %c0_i32 = arith.constant 0 : i32
    %c0_i32_0 = arith.constant 0 : i32
    %c0_i32_1 = arith.constant 0 : i32
    return %c0_i32, %c0_i32_0 : i32, i32
  }
  func.func @transform_3(%arg0: i32) -> (i32, i32) {
    %c0_i32 = arith.constant 0 : i32
    %c0_i32_0 = arith.constant 0 : i32
    %c0_i32_1 = arith.constant 0 : i32
    return %c0_i32, %c0_i32_0 : i32, i32
  }
  func.func @transform_4(%arg0: i32) -> (i32, i32) {
    %c0_i32 = arith.constant 0 : i32
    %c0_i32_0 = arith.constant 0 : i32
    %c0_i32_1 = arith.constant 0 : i32
    return %c0_i32, %c0_i32_0 : i32, i32
  }
  func.func @transform_5(%arg0: i32) -> (i32, i32) {
    %c0_i32 = arith.constant 0 : i32
    %c0_i32_0 = arith.constant 0 : i32
    return %arg0, %c0_i32 : i32, i32
  }
}

</mosaic_0001>

<bundles_post_ra>
// kernel: tpu_custom_call.1
= control target key start
LH: loop header
LB: loop body
LE: loop exit
PB: predicated region body
PF: predicated region fallthrough
CT: control target
= control target key end

     0   :  { %v322_v1 = vmov 0.0   ;;  %vm323_vm0 = vmmov 0   ;;  %s417_s0 = inlined_call_operand.vmem [shape: f32[8,96], index: 0, kind: input, shape index: {}]   ;;  %s418_s1 = inlined_call_operand.vmem [shape: f32[96,32], index: 1, kind: input, shape index: {}]   ;;  %s419_s2 = inlined_call_operand.vmem [shape: f32[1,32], index: 2, kind: input, shape index: {}]   ;;  %s420_s3 = inlined_call_operand.vmem [shape: f32[32,32], index: 3, kind: input, shape index: {}]   ;;  %s421_s4 = inlined_call_operand.vmem [shape: f32[1,32], index: 4, kind: input, shape index: {}]   ;;  %s422_s5 = inlined_call_operand.hbm [shape: f32[8,32], index: 5, kind: output, shape index: {}]  }
   0x1   :  { %v33_v0 = vld [vmem:[%s418_s1 + $0x58] sm:$0xff]  ;;  %251 = vmatprep.subr.mxu0 %v322_v1  ;;  %v32_v2 = vld [vmem:[%s418_s1 + $0x50] sm:$0xff]  ;;  %275 = vmatprep.mubr.msk.f32.mxu0 %vm323_vm0, %v322_v1  ;;  %v31_v3 = vld [vmem:[%s418_s1 + $0x48] sm:$0xff] }
   0x2   :  { %252 = vmatpush3.msra.mxu0 %v33_v0  ;;  %278 = vmatprep.subr.mxu1 %v322_v1 }
   0x3   :  { %253 = vmatprep.subr.mxu0 %v322_v1  ;;  %286 = vmatprep.mubr.msk.f32.mxu1 %vm323_vm0, %v322_v1 }
   0x4   :  { %254 = vmatpush3.msra.mxu0 %v32_v2 }
   0x5   :  { %10 = vsyncpa [#allocation3], 0  ;;  %255 = vmatprep.subr.mxu0 %v322_v1  ;;  %v30_v4 = vld [vmem:[%s418_s1 + $0x40] sm:$0xff]  ;;  %v29_v5 = vld [vmem:[%s418_s1 + $0x38] sm:$0xff]  ;;  %vm41_vm1 = vcmask 785408   ;;  %vm132_vm2 = vcmask 261120  }
   0x6   :  { %256 = vmatpush3.msra.mxu0 %v31_v3  ;;  %v28_v6 = vld [vmem:[%s418_s1 + $0x30] sm:$0xff]  ;;  %v27_v7 = vld [vmem:[%s418_s1 + $0x28] sm:$0xff]  ;;  %v26_v8 = vld [vmem:[%s418_s1 + $0x20] sm:$0xff] }
   0x7   :  { %257 = vmatprep.subr.mxu0 %v322_v1  ;;  %v25_v9 = vld [vmem:[%s418_s1 + $0x18] sm:$0xff]  ;;  %v24_v10 = vld [vmem:[%s418_s1 + $0x10] sm:$0xff]  ;;  %v23_v11 = vld [vmem:[%s418_s1 + $0x8] sm:$0xff] }
   0x8   :  { %258 = vmatpush3.msra.mxu0 %v30_v4  ;;  %v22_v12 = vld [vmem:[%s418_s1] sm:$0xff]  ;;  %v124_v14 = vld [vmem:[%s420_s3 + $0x18] sm:$0xff]  ;;  %v123_v15 = vld [vmem:[%s420_s3 + $0x10] sm:$0xff] }
   0x9   :  { %259 = vmatprep.subr.mxu0 %v322_v1  ;;  %v21_v13 = vld [vmem:[%s417_s0] sm:$0xff]  ;;  %279 = vmatpush3.msra.mxu1 %v124_v14  ;;  %v122_v16 = vld [vmem:[%s420_s3 + $0x8] sm:$0xff] }
   0xa   :  { %260 = vmatpush3.msra.mxu0 %v29_v5  ;;  %280 = vmatprep.subr.mxu1 %v322_v1  ;;  %v121_v17 = vld [vmem:[%s420_s3] sm:$0xff] }
   0xb   :  { %261 = vmatprep.subr.mxu0 %v322_v1  ;;  %281 = vmatpush3.msra.mxu1 %v123_v15  ;;  %v227_v18 = vld [vmem:[%s419_s2] ss:$0 sm:$0xff]  ;;  %s324_s2 = smov [#allocation2]  }
   0xc   :  { %262 = vmatpush3.msra.mxu0 %v28_v6  ;;  %282 = vmatprep.subr.mxu1 %v322_v1  ;;  %v230_v26 = vld [vmem:[%s421_s4] ss:$0 sm:$0xff]  ;;  %s219_s28 = sshll.u32 %s324_s2, 4  ;;  %s220_s28 = int_to_ptr.vmem [resolvable:$true] %s219_s28 }
   0xd   :  { %263 = vmatprep.subr.mxu0 %v322_v1  ;;  %283 = vmatpush3.msra.mxu1 %v122_v16  ;;  %s300_s29 = scalar_lea.vmem %s220_s28, 128  ;;  %p305_p1 = scmp.lt.s32.totalorder %s220_s28, %s220_s28 }
   0xe   :  { %264 = vmatpush3.msra.mxu0 %v27_v7  ;;  %284 = vmatprep.subr.mxu1 %v322_v1  ;;  %p301_p0 = scmp.ne.s32.totalorder %s220_s28, %s300_s29  ;;  %p306_p2 = scmp.lt.s32.totalorder %s300_s29, %s300_s29 }
   0xf   :  { %265 = vmatprep.subr.mxu0 %v322_v1  ;;  %285 = vmatpush3.msra.mxu1 %v121_v17 }
  0x10   :  { %266 = vmatpush3.msra.mxu0 %v26_v8  ;;  %p307_p3 = por %p306_p2, %p305_p1 }
  0x11   :  { %267 = vmatprep.subr.mxu0 %v322_v1 }
  0x12   :  { %268 = vmatpush3.msra.mxu0 %v25_v9  ;;  %p308_p4 = pnand %p307_p3, %p301_p0 }
  0x13   :  { %269 = vmatprep.subr.mxu0 %v322_v1 }
  0x14   :  { %270 = vmatpush3.msra.mxu0 %v24_v10 }
  0x15   :  { %271 = vmatprep.subr.mxu0 %v322_v1 }
  0x16   :  { %272 = vmatpush3.msra.mxu0 %v23_v11 }
  0x17   :  { %273 = vmatprep.subr.mxu0 %v322_v1 }
  0x18   :  { %274 = vmatpush3.msra.mxu0 %v22_v12 }
  0x19   :  { %276 = vmatmul.mubr.msk.f32.vlgmr.msra.gmra.mxu0 %vm41_vm1, %v21_v13 }
  0xd9   :  { %v111_v19 = vpop.f32.mrf.mxu0 }
  0xda   :  { %v112_v20 = vadd.f32 %v227_v18, %v111_v19 }
  0xdb   :  { %v277_v21 = vpop.f32.mrf.mxu0 }
  0xdc   :  { %v229_v22 = vmul.f32 -1.442695, %v112_v20 }
  0xde   :  { %292 = vpow2.f32 %v229_v22 }
  0xeb   :  { %v293_v23 = vpop.eup %292 }
  0xec   :  { %v118_v24 = vadd.f32 1.0, %v293_v23 }
  0xee   :  { %294 = vrcp.f32 %v118_v24 }
  0xfb   :  { %v295_v25 = vpop.eup %294 }
  0xfc   :  { %287 = vmatmul.mubr.msk.f32.vlgmr.msra.gmra.mxu1 %vm132_vm2, %v295_v25 }
 0x1bc   :  { %v202_v27 = vpop.f32.mrf.mxu1 }
 0x1bd   :  { %v203_v28 = vadd.f32 %v230_v26, %v202_v27 }
 0x1be   :  { %v288_v29 = vpop.f32.mrf.mxu1 }
 0x1bf   :  { %v232_v30 = vmul.f32 -1.442695, %v203_v28 }
 0x1c1   :  { %296 = vpow2.f32 %v232_v30 }
 0x1ce   :  { %v297_v31 = vpop.eup %296 }
 0x1cf   :  { %v209_v32 = vadd.f32 1.0, %v297_v31 }
 0x1d1   :  { %298 = vrcp.f32 %v209_v32 }
 0x1de   :  { %v299_v33 = vpop.eup %298 }
 0x1df   :  { %212 = vst.msk [vmem:[#allocation2] sm:$0xff] %vm132_vm2, %v299_v33 }
 0x1e0   :  { %311 = shalt.err (!%p308_p4)
}
 0x1e1   :  { %222 = dma.vmem_to_hbm [thread:$0]  %s220_s28, 128, %s422_s5, [#allocation3]  }
 0x1e2   :  { %320 = dma.done.wait [#allocation3], 128  }
 0x1e3   :  { %321 = vsyncadd [#allocation3], 4294967168 }
 0x1e4   :  { %226 = vsyncpa [#allocation3], 1 }

</bundles_post_ra>
